<compile_context>
chip_gen: v6e
topology: v6e:2x2x1
jax: 0.10.0
libtpu: 0.0.40
codegen_flags: <defaults>
</compile_context>

<pallas_src>
import jax
import jax.numpy as jnp
from jax import lax
from jax.experimental import pallas as pl
from jax.experimental.pallas import tpu as pltpu


def make_convap_kernel(TB, C_in, R, LS, inv_area, use_vpu_conv):
    def convap_kernel(x_ref, pm_ref, w_ref, b_ref, o_ref, acc_ref):
        # x_ref  : (TB, C_in, hw_tile)   TB images, NCHW-native, lane-dense HW tile
        # pm_ref : (hw_tile, N)          0/1 pooling selection matrix (N = LS or S)
        # w_ref  : (C_in, R, LS) f32     pre-grouped 1x1-conv weight   [VPU path]
        #          (C_out, C_in)         plain 1x1-conv weight         [MXU path]
        # b_ref  : (R, LS) f32           pre-grouped bias              [VPU path]
        #          (C_out, 1) f32        plain bias                    [MXU path]
        # o_ref  : (TB, R, LS)           pooled + conv + L2-normalized output
        # acc_ref: (TB*C_in, N) f32      pooling accumulator across HW tiles
        k = pl.program_id(1)

        @pl.when(k == 0)
        def _init():
            acc_ref[...] = jnp.zeros_like(acc_ref)

        # Batched pooling partial sum: one MXU matmul for all TB images; the
        # contraction runs over the lane-dense HW tile.
        xb = x_ref[...].reshape(TB * C_in, -1)
        acc_ref[...] += jnp.dot(xb, pm_ref[...],
                                preferred_element_type=jnp.float32)

        @pl.when(k == pl.num_programs(1) - 1)
        def _finalize():
            # 1/(hb*wb) applied once in f32 -> exact adaptive-average-pool mean.
            acc = acc_ref[...] * jnp.float32(inv_area)        # (TB*C_in, N) f32

            if use_vpu_conv:
                # Tiny C_in: short broadcast-FMA chain on the VPU (a K<=8 matmul
                # would waste a full MXU pass). Pre-grouped weight/bias make the
                # result lane-dense with zero in-kernel relayout. Hoisted loads.
                w2 = w_ref[...]                               # (C_in, R, LS) f32
                bias2 = b_ref[...]                            # (R, LS) f32
                ys = []
                for b in range(TB):                           # static unroll, TB small
                    yb = bias2
                    for c in range(C_in):
                        row = acc[b * C_in + c:b * C_in + c + 1, :]   # (1, LS)
                        yb = yb + w2[c] * row                          # (R, LS)
                    ys.append(yb)
            else:
                # Large C_in: per-image MXU matmul (M=C_out, K=C_in, N=S).
                w_f32 = w_ref[...].astype(jnp.float32)        # (C_out, C_in), hoisted
                bias = b_ref[...]                             # (C_out, 1) f32
                ys = []
                for b in range(TB):
                    t = acc[b * C_in:(b + 1) * C_in, :]       # (C_in, S)
                    yb = jnp.dot(w_f32, t,
                                 preferred_element_type=jnp.float32) + bias
                    # Lane-dense regroup (c*S+s order preserved); one small
                    # relayout per image (reviewer-sanctioned XLU interleave).
                    ys.append(yb.reshape(R, LS))

            # F.normalize(flatten(1), p=2, dim=1): x / max(||x||_2, 1e-12).
            # rsqrt runs on the EUP (free slot) instead of sqrt+divide on the VPU.
            outs = []
            for yb in ys:
                ssq = jnp.sum(yb * yb)
                inv = lax.rsqrt(jnp.maximum(ssq, 1e-24))
                outs.append(yb * inv)
            # Single lane-dense store of all TB images.
            o_ref[...] = jnp.stack(outs, axis=0).astype(o_ref.dtype)

    return convap_kernel


def _largest_divisor_leq(n, limit):
    best = 1
    for d in range(1, n + 1):
        if n % d == 0 and d <= limit:
            best = d
    return best


def _choose_tiles(B, C_in, HW, itemsize, x_budget_bytes):
    """Pick (TB, hw_tile) from a VMEM byte budget for the double-buffered x block."""
    # HW tile (reduction axis): whole image if it fits, else the largest multiple
    # of 128 dividing HW that fits the budget at TB=1.
    # TODO(synk): HW not a multiple of 128 with very large images falls back to a
    #             single full-HW tile (relies on vmem_limit_bytes).
    if 2 * C_in * HW * itemsize <= x_budget_bytes or HW % 128 != 0:
        hw_tile = HW
    else:
        hw_tile = 128
        for t in range(128, HW + 1, 128):
            if HW % t == 0 and 2 * C_in * t * itemsize <= x_budget_bytes:
                hw_tile = t
    # TB: largest divisor of B fitting the budget while keeping >= 2 grid steps
    # on the batch axis (so both v7x TensorCores get work).
    tb = 1
    for cand in range(1, B + 1):
        if B % cand:
            continue
        if 2 * cand * C_in * hw_tile * itemsize > x_budget_bytes:
            continue
        if B >= 2 and B // cand < 2:
            continue
        tb = cand
    return tb, hw_tile


def build_pool_select_T(H, W, s1, s2):
    """(H*W, s1*s2) 0/1 matrix selecting each pixel's adaptive-avg-pool bin."""
    # TODO(synk): non-divisible adaptive pooling bins (uneven bin sizes) not
    #             implemented; assumes H % s1 == 0 and W % s2 == 0.
    assert H % s1 == 0 and W % s2 == 0
    hb, wb = H // s1, W // s2
    h_bin = jnp.arange(H) // hb
    w_bin = jnp.arange(W) // wb
    bin_idx = (h_bin[:, None] * s2 + w_bin[None, :]).reshape(-1)        # (H*W,)
    return jax.nn.one_hot(bin_idx, s1 * s2, dtype=jnp.float32)          # 0/1 exact


def convap_forward(x_nchw, weight, bias, s1=2, s2=2):
    """x_nchw: (B, C_in, H, W); weight: (C_out, C_in, 1, 1); bias: (C_out,)."""
    B, C_in, H, W = x_nchw.shape
    C_out = weight.shape[0]
    S = s1 * s2
    HW = H * W
    hb, wb = H // s1, W // s2
    inv_area = 1.0 / float(hb * wb)

    # Channel grouping: output minor dim = L*S lanes (<= 128), and the row-major
    # flat index r*(L*S) + l*S + s == (r*L+l)*S + s == c*S + s (PyTorch order).
    L = _largest_divisor_leq(C_out, max(1, 128 // S))
    R = C_out // L
    LS = L * S

    use_vpu_conv = C_in <= 8          # a K<=8 matmul wastes a full MXU pass

    # Generation-aware VMEM budget (64 MiB v7x, 128 MiB v5e/v6e physical); the
    # double-buffered x block gets ~1/4 of it.
    try:
        vmem_cap = int(pltpu.get_tpu_info().vmem_capacity_bytes)
    except Exception:
        vmem_cap = 64 * 1024 * 1024   # conservative (v7x per-TC)
    itemsize = jnp.dtype(x_nchw.dtype).itemsize
    TB, hw_tile = _choose_tiles(B, C_in, HW, itemsize, vmem_cap // 4)

    # Free contiguous reshape only on x -- no transposes, no dtype casts.
    x = x_nchw.reshape(B, C_in, HW)

    # 0/1 pooling selection matrix; for the VPU path it is lane-tiled so the
    # pool matmul's result is already lane-dense (free on the MXU: N<=128 is one
    # pass either way, and lane padding makes the VMEM cost identical).
    P_sel = build_pool_select_T(H, W, s1, s2)                           # (HW, S)
    if use_vpu_conv:
        P_sel = jnp.tile(P_sel, (1, L))                                 # (HW, LS)
    pool_mat = P_sel.astype(x.dtype)
    N_pool = pool_mat.shape[1]

    # Parameter layout plumbing (tiny, data-independent), all f32 for the VPU.
    w_oc = weight.reshape(C_out, C_in)
    if use_vpu_conv:
        w_grp = w_oc.astype(jnp.float32).T.reshape(C_in, R, L)          # [c,r,l]=w[r*L+l,c]
        w_in = jnp.broadcast_to(w_grp[..., None], (C_in, R, L, S)).reshape(C_in, R, LS)
        b_grp = bias.astype(jnp.float32).reshape(R, L)
        b_in = jnp.broadcast_to(b_grp[..., None], (R, L, S)).reshape(R, LS)
        w_spec = pl.BlockSpec((C_in, R, LS), lambda bi, k: (0, 0, 0))
        b_spec = pl.BlockSpec((R, LS), lambda bi, k: (0, 0))
    else:
        w_in = w_oc
        b_in = bias.astype(jnp.float32).reshape(C_out, 1)
        w_spec = pl.BlockSpec((C_out, C_in), lambda bi, k: (0, 0))
        b_spec = pl.BlockSpec((C_out, 1), lambda bi, k: (0, 0))

    grid = (B // TB, HW // hw_tile)   # batch ("parallel") first, HW reduction last

    # Explicit VMEM limit with headroom (scoped defaults: 16 MiB v5e, 32 MiB v6e/v7x).
    x_blk = TB * C_in * hw_tile * itemsize
    pm_blk = hw_tile * max(N_pool, 128) * pool_mat.dtype.itemsize
    o_blk = TB * R * max(LS, 128) * itemsize
    param_b = (w_in.size + b_in.size) * 4
    acc_b = TB * C_in * max(N_pool, 128) * 4
    est = 2 * (x_blk + pm_blk + o_blk) + param_b + acc_b + (2 << 20)
    vmem_limit = int(min(max(2 * est, 32 << 20), int(0.85 * vmem_cap)))

    # TODO(synk): if xprof still shows exposed DMA for production H*W, raise the
    #             x in_spec to pipeline_mode=pl.Buffered(3) (VMEM budget permitting).
    out = pl.pallas_call(
        make_convap_kernel(TB, C_in, R, LS, inv_area, use_vpu_conv),
        out_shape=jax.ShapeDtypeStruct((B, R, LS), x_nchw.dtype),
        grid_spec=pltpu.PrefetchScalarGridSpec(
            num_scalar_prefetch=0,
            grid=grid,
            in_specs=[
                pl.BlockSpec((TB, C_in, hw_tile), lambda bi, k: (bi, 0, k)),
                pl.BlockSpec((hw_tile, N_pool), lambda bi, k: (k, 0)),
                w_spec,
                b_spec,
            ],
            out_specs=pl.BlockSpec((TB, R, LS), lambda bi, k: (bi, 0, 0)),
            scratch_shapes=[pltpu.VMEM((TB * C_in, N_pool), jnp.float32)],
        ),
        compiler_params=pltpu.CompilerParams(
            dimension_semantics=("parallel", "arbitrary"),
            vmem_limit_bytes=vmem_limit,
        ),
    )(x, pool_mat, w_in, b_in)                                          # (B, R, LS)

    # Free contiguous reshape == PyTorch NCHW flatten(1) order (c*S + s).
    return out.reshape(B, C_out * S)


def convap_reference(x_nchw, weight, bias, s1=2, s2=2):
    """Pure-JAX reference mirroring the PyTorch forward exactly."""
    B, C_in, H, W = x_nchw.shape
    C_out = weight.shape[0]
    w2 = weight.reshape(C_out, C_in)
    conv = jnp.einsum("bchw,oc->bohw", x_nchw, w2) + bias[None, :, None, None]
    hb, wb = H // s1, W // s2
    pooled = conv.reshape(B, C_out, s1, hb, s2, wb).mean(axis=(3, 5))
    flat = pooled.reshape(B, -1)
    norm = jnp.maximum(jnp.linalg.norm(flat, axis=1, keepdims=True), 1e-12)
    return flat / norm


if __name__ == "__main__":
    # Small shapes consistent with the module: ConvAP(in_channels=4, out_channels=32, s1=2, s2=2)
    B, C_in, H, W = 2, 4, 16, 16
    C_out, s1, s2 = 32, 2, 2

    key = jax.random.PRNGKey(0)
    kx, kw, kb = jax.random.split(key, 3)
    x = jax.random.normal(kx, (B, C_in, H, W), dtype=jnp.float32)
    # Deterministic "Conv2d" parameters (kaiming-uniform-ish bound, like PyTorch default)
    bound = 1.0 / (C_in ** 0.5)
    weight = jax.random.uniform(kw, (C_out, C_in, 1, 1), minval=-bound, maxval=bound,
                                dtype=jnp.float32)
    bias = jax.random.uniform(kb, (C_out,), minval=-bound, maxval=bound, dtype=jnp.float32)

    out = jax.jit(convap_forward, static_argnames=("s1", "s2"))(
        x, weight, bias, s1=s1, s2=s2)
    out = jax.block_until_ready(out)

    ref = convap_reference(x, weight, bias, s1=s1, s2=s2)
    assert out.shape == (B, C_out * s1 * s2), out.shape
    max_err = float(jnp.max(jnp.abs(out - ref)))
    assert jnp.allclose(out, ref, atol=1e-5, rtol=1e-5), max_err

    print("KERNEL_OK")
</pallas_src>

<mosaic_0001>
module attributes {stable_mosaic.version = 11 : i64} {
  func.func @convap_kernel(%arg0: i32, %arg1: i32, %arg2: memref<1x4x256xf32, #tpu.memory_space<vmem>>, %arg3: memref<256x128xf32, #tpu.memory_space<vmem>>, %arg4: memref<4x1x128xf32, #tpu.memory_space<vmem>>, %arg5: memref<1x128xf32, #tpu.memory_space<vmem>>, %arg6: memref<1x1x128xf32, #tpu.memory_space<vmem>>, %arg7: memref<4x128xf32, #tpu.memory_space<vmem>>) attributes {dimension_semantics = [#tpu.dimension_semantics<parallel>, #tpu.dimension_semantics<arbitrary>], iteration_bounds = array<i64: 2, 1>, scalar_prefetch = 0 : i64, scratch_operands = 1 : i64, tpu.core_type = #tpu.core_type<tc>, window_params = [{transform_indices = @transform_0, window_bounds = array<i64: 1, 4, 256>}, {transform_indices = @transform_1, window_bounds = array<i64: 256, 128>}, {pipeline_mode = #tpu.pipeline_mode<synchronous>, transform_indices = @transform_2, window_bounds = array<i64: 4, 1, 128>}, {pipeline_mode = #tpu.pipeline_mode<synchronous>, transform_indices = @transform_3, window_bounds = array<i64: 1, 128>}, {transform_indices = @transform_4, window_bounds = array<i64: 1, 1, 128>}]} {
    %c0_i32 = arith.constant 0 : i32
    %0 = arith.cmpi eq, %arg1, %c0_i32 : i32
    %1 = arith.extui %0 : i1 to i32
    %c0_i32_0 = arith.constant 0 : i32
    %2 = arith.cmpi ne, %1, %c0_i32_0 : i32
    scf.if %2 {
      %cst_11 = arith.constant 0.000000e+00 : f32
      %13 = vector.broadcast %cst_11 : f32 to vector<4x128xf32>
      %c0_12 = arith.constant 0 : index
      %c0_13 = arith.constant 0 : index
      %14 = vector.load %arg7[%c0_12, %c0_13] : memref<4x128xf32, #tpu.memory_space<vmem>>, vector<4x128xf32>
      tpu.vector_store %arg7[%c0_12, %c0_13], %13 {strides = array<i32>} : memref<4x128xf32, #tpu.memory_space<vmem>>, vector<4x128xf32>,
    } else {
    }
    %c0 = arith.constant 0 : index
    %c0_1 = arith.constant 0 : index
    %c0_2 = arith.constant 0 : index
    %3 = vector.load %arg2[%c0, %c0_1, %c0_2] : memref<1x4x256xf32, #tpu.memory_space<vmem>>, vector<1x4x256xf32>
    %4 = vector.shape_cast %3 : vector<1x4x256xf32> to vector<4x256xf32>
    %c0_3 = arith.constant 0 : index
    %c0_4 = arith.constant 0 : index
    %5 = vector.load %arg7[%c0_3, %c0_4] : memref<4x128xf32, #tpu.memory_space<vmem>>, vector<4x128xf32>
    %c0_5 = arith.constant 0 : index
    %c0_6 = arith.constant 0 : index
    %6 = vector.load %arg3[%c0_5, %c0_6] : memref<256x128xf32, #tpu.memory_space<vmem>>, vector<256x128xf32>
    %cst = arith.constant dense<0.000000e+00> : vector<4x128xf32>
    %7 = tpu.matmul %4, %6, %cst {dimension_numbers = #tpu.dot_dimension_numbers<[1], [0], [0], [1], [0, 0, 1, 1], [], []>} : vector<4x256xf32>, vector<256x128xf32>, vector<4x128xf32> -> vector<4x128xf32>
    %8 = arith.addf %5, %7 : vector<4x128xf32>
    %c0_7 = arith.constant 0 : index
    %c0_8 = arith.constant 0 : index
    %9 = vector.load %arg7[%c0_7, %c0_8] : memref<4x128xf32, #tpu.memory_space<vmem>>, vector<4x128xf32>
    tpu.vector_store %arg7[%c0_7, %c0_8], %8 {strides = array<i32>} : memref<4x128xf32, #tpu.memory_space<vmem>>, vector<4x128xf32>,
    %c0_i32_9 = arith.constant 0 : i32
    %10 = arith.cmpi eq, %arg1, %c0_i32_9 : i32
    %11 = arith.extui %10 : i1 to i32
    %c0_i32_10 = arith.constant 0 : i32
    %12 = arith.cmpi ne, %11, %c0_i32_10 : i32
    scf.if %12 {
      %c0_11 = arith.constant 0 : index
      %c0_12 = arith.constant 0 : index
      %13 = vector.load %arg7[%c0_11, %c0_12] : memref<4x128xf32, #tpu.memory_space<vmem>>, vector<4x128xf32>
      %cst_13 = arith.constant 1.562500e-02 : f32
      %14 = vector.broadcast %cst_13 : f32 to vector<4x128xf32>
      %15 = arith.mulf %13, %14 : vector<4x128xf32>
      %c0_14 = arith.constant 0 : index
      %c0_15 = arith.constant 0 : index
      %c0_16 = arith.constant 0 : index
      %16 = vector.load %arg4[%c0_14, %c0_15, %c0_16] : memref<4x1x128xf32, #tpu.memory_space<vmem>>, vector<4x1x128xf32>
      %c0_17 = arith.constant 0 : index
      %c0_18 = arith.constant 0 : index
      %17 = vector.load %arg5[%c0_17, %c0_18] : memref<1x128xf32, #tpu.memory_space<vmem>>, vector<1x128xf32>
      %18 = vector.extract_strided_slice %15 {offsets = [0, 0], sizes = [1, 128], strides = [1, 1]} : vector<4x128xf32> to vector<1x128xf32>
      %19 = vector.extract_strided_slice %16 {offsets = [0, 0, 0], sizes = [1, 1, 128], strides = [1, 1, 1]} : vector<4x1x128xf32> to vector<1x1x128xf32>
      %20 = vector.shape_cast %19 : vector<1x1x128xf32> to vector<1x128xf32>
      %21 = arith.mulf %20, %18 : vector<1x128xf32>
      %22 = arith.addf %17, %21 : vector<1x128xf32>
      %23 = vector.extract_strided_slice %15 {offsets = [1, 0], sizes = [1, 128], strides = [1, 1]} : vector<4x128xf32> to vector<1x128xf32>
      %24 = vector.extract_strided_slice %16 {offsets = [1, 0, 0], sizes = [1, 1, 128], strides = [1, 1, 1]} : vector<4x1x128xf32> to vector<1x1x128xf32>
      %25 = vector.shape_cast %24 : vector<1x1x128xf32> to vector<1x128xf32>
      %26 = arith.mulf %25, %23 : vector<1x128xf32>
      %27 = arith.addf %22, %26 : vector<1x128xf32>
      %28 = vector.extract_strided_slice %15 {offsets = [2, 0], sizes = [1, 128], strides = [1, 1]} : vector<4x128xf32> to vector<1x128xf32>
      %29 = vector.extract_strided_slice %16 {offsets = [2, 0, 0], sizes = [1, 1, 128], strides = [1, 1, 1]} : vector<4x1x128xf32> to vector<1x1x128xf32>
      %30 = vector.shape_cast %29 : vector<1x1x128xf32> to vector<1x128xf32>
      %31 = arith.mulf %30, %28 : vector<1x128xf32>
      %32 = arith.addf %27, %31 : vector<1x128xf32>
      %33 = vector.extract_strided_slice %15 {offsets = [3, 0], sizes = [1, 128], strides = [1, 1]} : vector<4x128xf32> to vector<1x128xf32>
      %34 = vector.extract_strided_slice %16 {offsets = [3, 0, 0], sizes = [1, 1, 128], strides = [1, 1, 1]} : vector<4x1x128xf32> to vector<1x1x128xf32>
      %35 = vector.shape_cast %34 : vector<1x1x128xf32> to vector<1x128xf32>
      %36 = arith.mulf %35, %33 : vector<1x128xf32>
      %37 = arith.addf %32, %36 : vector<1x128xf32>
      %38 = arith.mulf %37, %37 : vector<1x128xf32>
      %39 = vector.shape_cast %38 : vector<1x128xf32> to vector<1x1x128xf32>
      %cst_19 = arith.constant dense<0.000000e+00> : vector<1xf32>
      %40 = vector.multi_reduction <add>, %39, %cst_19 [1, 2] : vector<1x1x128xf32> to vector<1xf32>
      %41 = vector.shape_cast %40 : vector<1xf32> to vector<1x1x1xf32>
      %42 = vector.extract %41[0, 0, 0] : f32 from vector<1x1x1xf32>
      %cst_20 = arith.constant 1.000000e-24 : f32
      %43 = arith.maximumf %42, %cst_20 : f32
      %44 = math.rsqrt %43 : f32
      %45 = vector.broadcast %44 : f32 to vector<1x128xf32>
      %46 = arith.mulf %37, %45 : vector<1x128xf32>
      %47 = vector.shape_cast %46 : vector<1x128xf32> to vector<1x1x128xf32>
      %c0_21 = arith.constant 0 : index
      %c0_22 = arith.constant 0 : index
      %c0_23 = arith.constant 0 : index
      %48 = vector.load %arg6[%c0_21, %c0_22, %c0_23] : memref<1x1x128xf32, #tpu.memory_space<vmem>>, vector<1x1x128xf32>
      tpu.vector_store %arg6[%c0_21, %c0_22, %c0_23], %47 {strides = array<i32>} : memref<1x1x128xf32, #tpu.memory_space<vmem>>, vector<1x1x128xf32>,
    } else {
    }
    return
  }
  func.func @transform_0(%arg0: i32, %arg1: i32) -> (i32, i32, i32) {
    %c0_i32 = arith.constant 0 : i32
    %c0_i32_0 = arith.constant 0 : i32
    return %arg0, %c0_i32, %arg1 : i32, i32, i32
  }
  func.func @transform_1(%arg0: i32, %arg1: i32) -> (i32, i32) {
    %c0_i32 = arith.constant 0 : i32
    %c0_i32_0 = arith.constant 0 : i32
    return %arg1, %c0_i32 : i32, i32
  }
  func.func @transform_2(%arg0: i32, %arg1: i32) -> (i32, i32, i32) {
    %c0_i32 = arith.constant 0 : i32
    %c0_i32_0 = arith.constant 0 : i32
    %c0_i32_1 = arith.constant 0 : i32
    %c0_i32_2 = arith.constant 0 : i32
    return %c0_i32, %c0_i32_0, %c0_i32_1 : i32, i32, i32
  }
  func.func @transform_3(%arg0: i32, %arg1: i32) -> (i32, i32) {
    %c0_i32 = arith.constant 0 : i32
    %c0_i32_0 = arith.constant 0 : i32
    %c0_i32_1 = arith.constant 0 : i32
    return %c0_i32, %c0_i32_0 : i32, i32
  }
  func.func @transform_4(%arg0: i32, %arg1: i32) -> (i32, i32, i32) {
    %c0_i32 = arith.constant 0 : i32
    %c0_i32_0 = arith.constant 0 : i32
    %c0_i32_1 = arith.constant 0 : i32
    return %arg0, %c0_i32, %c0_i32_0 : i32, i32, i32
  }
}

</mosaic_0001>

<bundles_post_ra>
// kernel: tile.9
= control target key start
LH: loop header
LB: loop body
LE: loop exit
PB: predicated region body
PF: predicated region fallthrough
CT: control target
= control target key end

     0   :  { %s1157_s0 = inlined_call_operand.vmem [shape: f32[256,32,4], index: 0, kind: input, shape index: {}]   ;;  %s1158_s1 = inlined_call_operand.vmem [shape: f32[256,128], index: 1, kind: output, shape index: {}]  }
   0x1   :  { %v637_v0 = vld [vmem:[%s1157_s0 + $0xfc] sm:$0xf]  ;;  %v638_v1 = vld [vmem:[%s1157_s0 + $0xf8] sm:$0xf]  ;;  %v639_v2 = vld [vmem:[%s1157_s0 + $0xf4] sm:$0xf] }
   0x2   :  { %9 = vst [vmem:[#allocation0 + $0x148] sm:$0xf] %v637_v0  ;;  %14 = vst [vmem:[#allocation0 + $0x48] sm:$0xf] %v638_v1  ;;  %v640_v3 = vld [vmem:[%s1157_s0 + $0xf0] sm:$0xf] }
   0x3   :  { %19 = vst [vmem:[#allocation0 + $0x120] sm:$0xf] %v639_v2  ;;  %v641_v4 = vld [vmem:[%s1157_s0 + $0xec] sm:$0xf]  ;;  %v642_v5 = vld [vmem:[%s1157_s0 + $0xe8] sm:$0xf] }
   0x4   :  { %24 = vst [vmem:[#allocation0 + $0x1e0] sm:$0xf] %v640_v3  ;;  %29 = vst [vmem:[#allocation0 + $0x1a8] sm:$0xf] %v641_v4  ;;  %v643_v6 = vld [vmem:[%s1157_s0 + $0xe4] sm:$0xf] }
   0x5   :  { %34 = vst [vmem:[#allocation0 + $0x90] sm:$0xf] %v642_v5  ;;  %v644_v7 = vld [vmem:[%s1157_s0 + $0xe0] sm:$0xf]  ;;  %v645_v8 = vld [vmem:[%s1157_s0 + $0xdc] sm:$0xf] }
   0x6   :  { %39 = vst [vmem:[#allocation0 + $0xc8] sm:$0xf] %v643_v6  ;;  %44 = vst [vmem:[#allocation0 + $0x1b0] sm:$0xf] %v644_v7  ;;  %v646_v9 = vld [vmem:[%s1157_s0 + $0xd8] sm:$0xf] }
   0x7   :  { %49 = vst [vmem:[#allocation0 + $0x78] sm:$0xf] %v645_v8  ;;  %v647_v10 = vld [vmem:[%s1157_s0 + $0xd4] sm:$0xf]  ;;  %v648_v11 = vld [vmem:[%s1157_s0 + $0xd0] sm:$0xf] }
   0x8   :  { %54 = vst [vmem:[#allocation0 + $0xe8] sm:$0xf] %v646_v9  ;;  %59 = vst [vmem:[#allocation0 + $0xe0] sm:$0xf] %v647_v10  ;;  %v649_v12 = vld [vmem:[%s1157_s0 + $0xcc] sm:$0xf] }
   0x9   :  { %64 = vst [vmem:[#allocation0 + $0x160] sm:$0xf] %v648_v11  ;;  %v650_v13 = vld [vmem:[%s1157_s0 + $0xc8] sm:$0xf]  ;;  %v651_v14 = vld [vmem:[%s1157_s0 + $0xc4] sm:$0xf] }
   0xa   :  { %69 = vst [vmem:[#allocation0 + $0xd8] sm:$0xf] %v649_v12  ;;  %74 = vst [vmem:[#allocation0 + $0xa8] sm:$0xf] %v650_v13  ;;  %v652_v15 = vld [vmem:[%s1157_s0 + $0xc0] sm:$0xf] }
   0xb   :  { %79 = vst [vmem:[#allocation0 + $0xf0] sm:$0xf] %v651_v14  ;;  %v653_v16 = vld [vmem:[%s1157_s0 + $0xbc] sm:$0xf]  ;;  %v654_v17 = vld [vmem:[%s1157_s0 + $0xb8] sm:$0xf] }
   0xc   :  { %84 = vst [vmem:[#allocation0 + $0x198] sm:$0xf] %v652_v15  ;;  %89 = vst [vmem:[#allocation0 + $0x118] sm:$0xf] %v653_v16  ;;  %v655_v18 = vld [vmem:[%s1157_s0 + $0xb4] sm:$0xf] }
   0xd   :  { %94 = vst [vmem:[#allocation0 + $0x70] sm:$0xf] %v654_v17  ;;  %v656_v19 = vld [vmem:[%s1157_s0 + $0xb0] sm:$0xf]  ;;  %v657_v20 = vld [vmem:[%s1157_s0 + $0xac] sm:$0xf] }
   0xe   :  { %99 = vst [vmem:[#allocation0 + $0xc0] sm:$0xf] %v655_v18  ;;  %104 = vst [vmem:[#allocation0 + $0xb8] sm:$0xf] %v656_v19  ;;  %v658_v21 = vld [vmem:[%s1157_s0 + $0xa8] sm:$0xf] }
   0xf   :  { %109 = vst [vmem:[#allocation0 + $0x178] sm:$0xf] %v657_v20  ;;  %v659_v22 = vld [vmem:[%s1157_s0 + $0xa4] sm:$0xf]  ;;  %v660_v23 = vld [vmem:[%s1157_s0 + $0xa0] sm:$0xf] }
  0x10   :  { %114 = vst [vmem:[#allocation0 + $0x50] sm:$0xf] %v658_v21  ;;  %119 = vst [vmem:[#allocation0 + $0x40] sm:$0xf] %v659_v22  ;;  %v661_v24 = vld [vmem:[%s1157_s0 + $0x9c] sm:$0xf] }
  0x11   :  { %124 = vst [vmem:[#allocation0 + $0x1d0] sm:$0xf] %v660_v23  ;;  %v662_v25 = vld [vmem:[%s1157_s0 + $0x98] sm:$0xf]  ;;  %v663_v26 = vld [vmem:[%s1157_s0 + $0x94] sm:$0xf] }
  0x12   :  { %129 = vst [vmem:[#allocation0 + $0x10] sm:$0xf] %v661_v24  ;;  %134 = vst [vmem:[#allocation0 + $0x100] sm:$0xf] %v662_v25  ;;  %v664_v27 = vld [vmem:[%s1157_s0 + $0x90] sm:$0xf] }
  0x13   :  { %139 = vst [vmem:[#allocation0 + $0x98] sm:$0xf] %v663_v26  ;;  %v665_v28 = vld [vmem:[%s1157_s0 + $0x8c] sm:$0xf]  ;;  %v666_v29 = vld [vmem:[%s1157_s0 + $0x88] sm:$0xf] }
  0x14   :  { %144 = vst [vmem:[#allocation0 + $0x1c8] sm:$0xf] %v664_v27  ;;  %149 = vst [vmem:[#allocation0 + $0x18] sm:$0xf] %v665_v28  ;;  %v667_v30 = vld [vmem:[%s1157_s0 + $0x84] sm:$0xf] }
  0x15   :  { %154 = vst [vmem:[#allocation0 + $0x1f8] sm:$0xf] %v666_v29  ;;  %v668_v31 = vld [vmem:[%s1157_s0 + $0x80] sm:$0xf]  ;;  %v669_v32 = vld [vmem:[%s1157_s0 + $0x7c] sm:$0xf] }
  0x16   :  { %159 = vst [vmem:[#allocation0 + $0x108] sm:$0xf] %v667_v30  ;;  %164 = vst [vmem:[#allocation0 + $0x1f0] sm:$0xf] %v668_v31  ;;  %v670_v33 = vld [vmem:[%s1157_s0 + $0x78] sm:$0xf] }
  0x17   :  { %169 = vst [vmem:[#allocation0 + $0xb0] sm:$0xf] %v669_v32  ;;  %v671_v34 = vld [vmem:[%s1157_s0 + $0x74] sm:$0xf]  ;;  %v672_v35 = vld [vmem:[%s1157_s0 + $0x70] sm:$0xf] }
  0x18   :  { %174 = vst [vmem:[#allocation0 + $0x28] sm:$0xf] %v670_v33  ;;  %179 = vst [vmem:[#allocation0 + $0xf8] sm:$0xf] %v671_v34  ;;  %v673_v36 = vld [vmem:[%s1157_s0 + $0x6c] sm:$0xf] }
  0x19   :  { %184 = vst [vmem:[#allocation0 + $0x130] sm:$0xf] %v672_v35  ;;  %v674_v37 = vld [vmem:[%s1157_s0 + $0x68] sm:$0xf]  ;;  %v675_v38 = vld [vmem:[%s1157_s0 + $0x64] sm:$0xf] }
  0x1a   :  { %189 = vst [vmem:[#allocation0 + $0x1b8] sm:$0xf] %v673_v36  ;;  %194 = vst [vmem:[#allocation0] sm:$0xf] %v674_v37  ;;  %v676_v39 = vld [vmem:[%s1157_s0 + $0x60] sm:$0xf] }
  0x1b   :  { %199 = vst [vmem:[#allocation0 + $0x1d8] sm:$0xf] %v675_v38  ;;  %v677_v40 = vld [vmem:[%s1157_s0 + $0x5c] sm:$0xf]  ;;  %v678_v41 = vld [vmem:[%s1157_s0 + $0x58] sm:$0xf] }
  0x1c   :  { %204 = vst [vmem:[#allocation0 + $0xd0] sm:$0xf] %v676_v39  ;;  %209 = vst [vmem:[#allocation0 + $0x58] sm:$0xf] %v677_v40  ;;  %v679_v42 = vld [vmem:[%s1157_s0 + $0x54] sm:$0xf] }
  0x1d   :  { %214 = vst [vmem:[#allocation0 + $0x8] sm:$0xf] %v678_v41  ;;  %v680_v43 = vld [vmem:[%s1157_s0 + $0x50] sm:$0xf]  ;;  %v681_v44 = vld [vmem:[%s1157_s0 + $0x4c] sm:$0xf] }
  0x1e   :  { %219 = vst [vmem:[#allocation0 + $0x110] sm:$0xf] %v679_v42  ;;  %224 = vst [vmem:[#allocation0 + $0x180] sm:$0xf] %v680_v43  ;;  %v682_v45 = vld [vmem:[%s1157_s0 + $0x48] sm:$0xf] }
  0x1f   :  { %229 = vst [vmem:[#allocation0 + $0x188] sm:$0xf] %v681_v44  ;;  %v683_v46 = vld [vmem:[%s1157_s0 + $0x44] sm:$0xf]  ;;  %v684_v47 = vld [vmem:[%s1157_s0 + $0x40] sm:$0xf] }
  0x20   :  { %234 = vst [vmem:[#allocation0 + $0x168] sm:$0xf] %v682_v45  ;;  %239 = vst [vmem:[#allocation0 + $0x20] sm:$0xf] %v683_v46  ;;  %v685_v48 = vld [vmem:[%s1157_s0 + $0x3c] sm:$0xf] }
  0x21   :  { %244 = vst [vmem:[#allocation0 + $0x128] sm:$0xf] %v684_v47  ;;  %v686_v49 = vld [vmem:[%s1157_s0 + $0x38] sm:$0xf]  ;;  %v687_v50 = vld [vmem:[%s1157_s0 + $0x34] sm:$0xf] }
  0x22   :  { %249 = vst [vmem:[#allocation0 + $0x140] sm:$0xf] %v685_v48  ;;  %254 = vst [vmem:[#allocation0 + $0x170] sm:$0xf] %v686_v49  ;;  %v688_v51 = vld [vmem:[%s1157_s0 + $0x30] sm:$0xf] }
  0x23   :  { %259 = vst [vmem:[#allocation0 + $0x150] sm:$0xf] %v687_v50  ;;  %v689_v52 = vld [vmem:[%s1157_s0 + $0x2c] sm:$0xf]  ;;  %v690_v53 = vld [vmem:[%s1157_s0 + $0x28] sm:$0xf] }
  0x24   :  { %264 = vst [vmem:[#allocation0 + $0x30] sm:$0xf] %v688_v51  ;;  %269 = vst [vmem:[#allocation0 + $0x88] sm:$0xf] %v689_v52  ;;  %v691_v54 = vld [vmem:[%s1157_s0 + $0x24] sm:$0xf] }
  0x25   :  { %274 = vst [vmem:[#allocation0 + $0x80] sm:$0xf] %v690_v53  ;;  %v692_v55 = vld [vmem:[%s1157_s0 + $0x20] sm:$0xf]  ;;  %v693_v56 = vld [vmem:[%s1157_s0 + $0x1c] sm:$0xf] }
  0x26   :  { %279 = vst [vmem:[#allocation0 + $0x190] sm:$0xf] %v691_v54  ;;  %284 = vst [vmem:[#allocation0 + $0x68] sm:$0xf] %v692_v55  ;;  %v694_v57 = vld [vmem:[%s1157_s0 + $0x18] sm:$0xf] }
  0x27   :  { %289 = vst [vmem:[#allocation0 + $0x60] sm:$0xf] %v693_v56  ;;  %v695_v58 = vld [vmem:[%s1157_s0 + $0x14] sm:$0xf]  ;;  %v696_v59 = vld [vmem:[%s1157_s0 + $0x10] sm:$0xf] }
  0x28   :  { %294 = vst [vmem:[#allocation0 + $0x1c0] sm:$0xf] %v694_v57  ;;  %299 = vst [vmem:[#allocation0 + $0x138] sm:$0xf] %v695_v58  ;;  %v697_v60 = vld [vmem:[%s1157_s0 + $0xc] sm:$0xf] }
  0x29   :  { %304 = vst [vmem:[#allocation0 + $0x38] sm:$0xf] %v696_v59  ;;  %v698_v61 = vld [vmem:[%s1157_s0 + $0x8] sm:$0xf]  ;;  %v699_v62 = vld [vmem:[%s1157_s0 + $0x4] sm:$0xf] }
  0x2a   :  { %309 = vst [vmem:[#allocation0 + $0xa0] sm:$0xf] %v697_v60  ;;  %314 = vst [vmem:[#allocation0 + $0x1e8] sm:$0xf] %v698_v61  ;;  %v319_v63 = vld [vmem:[%s1157_s0] sm:$0xf] }
  0x2b   :  { %318 = vst [vmem:[#allocation0 + $0x1a0] sm:$0xf] %v699_v62  ;;  %v408_v0 = vld [vmem:[#allocation0 + $0x8] sm:$0xf]   ;;  %v412_v1 = vld [vmem:[#allocation0 + $0x58] sm:$0xf]  }
  0x2c   :  { %320 = vst [vmem:[#allocation0 + $0x158] sm:$0xf] %v319_v63  ;;  %v396_v2 = vld [vmem:[#allocation0 + $0x188] sm:$0xf]   ;;  %v400_v3 = vld [vmem:[#allocation0 + $0x180] sm:$0xf]  }
  0x2d   :  { %v404_v4 = vld [vmem:[#allocation0 + $0x110] sm:$0xf]   ;;  %721 = vst [vmem:[%s1158_s1 + $0x54] sm:$0xf] %v408_v0   ;;  %722 = vst [vmem:[%s1158_s1 + $0x5c] sm:$0xf] %v412_v1  }
  0x2e   :  { %v384_v5 = vld [vmem:[#allocation0 + $0x128] sm:$0xf]   ;;  %v388_v6 = vld [vmem:[#allocation0 + $0x20] sm:$0xf]   ;;  %718 = vst [vmem:[%s1158_s1 + $0x4c] sm:$0xf] %v396_v2  }
  0x2f   :  { %v392_v7 = vld [vmem:[#allocation0 + $0x168] sm:$0xf]   ;;  %719 = vst [vmem:[%s1158_s1 + $0x50] sm:$0xf] %v400_v3   ;;  %720 = vst [vmem:[%s1158_s1 + $0x58] sm:$0xf] %v404_v4  }
  0x30   :  { %v372_v8 = vld [vmem:[#allocation0 + $0x150] sm:$0xf]   ;;  %v380_v10 = vld [vmem:[#allocation0 + $0x140] sm:$0xf]   ;;  %715 = vst [vmem:[%s1158_s1 + $0x40] sm:$0xf] %v384_v5  }
  0x31   :  { %v376_v9 = vld [vmem:[#allocation0 + $0x170] sm:$0xf]   ;;  %716 = vst [vmem:[%s1158_s1 + $0x48] sm:$0xf] %v388_v6   ;;  %717 = vst [vmem:[%s1158_s1 + $0x44] sm:$0xf] %v392_v7  }
  0x32   :  { %v360_v11 = vld [vmem:[#allocation0 + $0x80] sm:$0xf]   ;;  %v364_v12 = vld [vmem:[#allocation0 + $0x88] sm:$0xf]   ;;  %v368_v13 = vld [vmem:[#allocation0 + $0x30] sm:$0xf]  }
  0x33   :  { %712 = vst [vmem:[%s1158_s1 + $0x38] sm:$0xf] %v372_v8   ;;  %713 = vst [vmem:[%s1158_s1 + $0x34] sm:$0xf] %v376_v9   ;;  %v348_v14 = vld [vmem:[#allocation0 + $0x60] sm:$0xf]  }
  0x34   :  { %714 = vst [vmem:[%s1158_s1 + $0x3c] sm:$0xf] %v380_v10   ;;  %v352_v15 = vld [vmem:[#allocation0 + $0x68] sm:$0xf]   ;;  %v356_v16 = vld [vmem:[#allocation0 + $0x190] sm:$0xf]  }
  0x35   :  { %709 = vst [vmem:[%s1158_s1 + $0x24] sm:$0xf] %v360_v11   ;;  %710 = vst [vmem:[%s1158_s1 + $0x2c] sm:$0xf] %v364_v12   ;;  %v336_v17 = vld [vmem:[#allocation0 + $0x38] sm:$0xf]  }
  0x36   :  { %711 = vst [vmem:[%s1158_s1 + $0x30] sm:$0xf] %v368_v13   ;;  %v340_v18 = vld [vmem:[#allocation0 + $0x138] sm:$0xf]   ;;  %v344_v19 = vld [vmem:[#allocation0 + $0x1c0] sm:$0xf]  }
  0x37   :  { %706 = vst [vmem:[%s1158_s1 + $0x1c] sm:$0xf] %v348_v14   ;;  %707 = vst [vmem:[%s1158_s1 + $0x20] sm:$0xf] %v352_v15   ;;  %v324_v20 = vld [vmem:[#allocation0 + $0x1a0] sm:$0xf]  }
  0x38   :  { %708 = vst [vmem:[%s1158_s1 + $0x28] sm:$0xf] %v356_v16   ;;  %v328_v21 = vld [vmem:[#allocation0 + $0x1e8] sm:$0xf]   ;;  %v332_v22 = vld [vmem:[#allocation0 + $0xa0] sm:$0xf]  }
  0x39   :  { %703 = vst [vmem:[%s1158_s1 + $0x10] sm:$0xf] %v336_v17   ;;  %704 = vst [vmem:[%s1158_s1 + $0x18] sm:$0xf] %v340_v18   ;;  %v321_v23 = vld [vmem:[#allocation0 + $0x158] sm:$0xf]  }
  0x3a   :  { %705 = vst [vmem:[%s1158_s1 + $0x14] sm:$0xf] %v344_v19   ;;  %700 = vst [vmem:[%s1158_s1 + $0x8] sm:$0xf] %v324_v20   ;;  %v416_v24 = vld [vmem:[#allocation0 + $0xd0] sm:$0xf]  }
  0x3b   :  { %701 = vst [vmem:[%s1158_s1 + $0x4] sm:$0xf] %v328_v21   ;;  %702 = vst [vmem:[%s1158_s1 + $0xc] sm:$0xf] %v332_v22   ;;  %v420_v25 = vld [vmem:[#allocation0 + $0x1d8] sm:$0xf]  }
  0x3c   :  { %322 = vst [vmem:[%s1158_s1] sm:$0xf] %v321_v23   ;;  %723 = vst [vmem:[%s1158_s1 + $0x60] sm:$0xf] %v416_v24   ;;  %v424_v26 = vld [vmem:[#allocation0] sm:$0xf]  }
  0x3d   :  { %724 = vst [vmem:[%s1158_s1 + $0x68] sm:$0xf] %v420_v25   ;;  %v428_v27 = vld [vmem:[#allocation0 + $0x1b8] sm:$0xf]   ;;  %v432_v28 = vld [vmem:[#allocation0 + $0x130] sm:$0xf]  }
  0x3e   :  { %725 = vst [vmem:[%s1158_s1 + $0x64] sm:$0xf] %v424_v26   ;;  %726 = vst [vmem:[%s1158_s1 + $0x6c] sm:$0xf] %v428_v27   ;;  %v436_v29 = vld [vmem:[#allocation0 + $0xf8] sm:$0xf]  }
  0x3f   :  { %727 = vst [vmem:[%s1158_s1 + $0x70] sm:$0xf] %v432_v28   ;;  %v440_v30 = vld [vmem:[#allocation0 + $0x28] sm:$0xf]   ;;  %v444_v31 = vld [vmem:[#allocation0 + $0xb0] sm:$0xf]  }
  0x40   :  { %728 = vst [vmem:[%s1158_s1 + $0x78] sm:$0xf] %v436_v29   ;;  %729 = vst [vmem:[%s1158_s1 + $0x74] sm:$0xf] %v440_v30   ;;  %v448_v32 = vld [vmem:[#allocation0 + $0x1f0] sm:$0xf]  }
  0x41   :  { %730 = vst [vmem:[%s1158_s1 + $0x7c] sm:$0xf] %v444_v31   ;;  %v452_v33 = vld [vmem:[#allocation0 + $0x108] sm:$0xf]   ;;  %v456_v34 = vld [vmem:[#allocation0 + $0x1f8] sm:$0xf]  }
  0x42   :  { %731 = vst [vmem:[%s1158_s1 + $0x80] sm:$0xf] %v448_v32   ;;  %732 = vst [vmem:[%s1158_s1 + $0x88] sm:$0xf] %v452_v33   ;;  %v460_v35 = vld [vmem:[#allocation0 + $0x18] sm:$0xf]  }
  0x43   :  { %733 = vst [vmem:[%s1158_s1 + $0x84] sm:$0xf] %v456_v34   ;;  %v464_v36 = vld [vmem:[#allocation0 + $0x1c8] sm:$0xf]   ;;  %v468_v37 = vld [vmem:[#allocation0 + $0x98] sm:$0xf]  }
  0x44   :  { %734 = vst [vmem:[%s1158_s1 + $0x8c] sm:$0xf] %v460_v35   ;;  %735 = vst [vmem:[%s1158_s1 + $0x90] sm:$0xf] %v464_v36   ;;  %v472_v38 = vld [vmem:[#allocation0 + $0x100] sm:$0xf]  }
  0x45   :  { %736 = vst [vmem:[%s1158_s1 + $0x98] sm:$0xf] %v468_v37   ;;  %v476_v39 = vld [vmem:[#allocation0 + $0x10] sm:$0xf]   ;;  %737 = vst [vmem:[%s1158_s1 + $0x94] sm:$0xf] %v472_v38  }
  0x46   :  { %v480_v40 = vld [vmem:[#allocation0 + $0x1d0] sm:$0xf]   ;;  %738 = vst [vmem:[%s1158_s1 + $0x9c] sm:$0xf] %v476_v39   ;;  %v484_v41 = vld [vmem:[#allocation0 + $0x40] sm:$0xf]  }
  0x47   :  { %739 = vst [vmem:[%s1158_s1 + $0xa0] sm:$0xf] %v480_v40   ;;  %v488_v42 = vld [vmem:[#allocation0 + $0x50] sm:$0xf]   ;;  %v492_v43 = vld [vmem:[#allocation0 + $0x178] sm:$0xf]  }
  0x48   :  { %740 = vst [vmem:[%s1158_s1 + $0xa8] sm:$0xf] %v484_v41   ;;  %741 = vst [vmem:[%s1158_s1 + $0xa4] sm:$0xf] %v488_v42   ;;  %v496_v44 = vld [vmem:[#allocation0 + $0xb8] sm:$0xf]  }
  0x49   :  { %742 = vst [vmem:[%s1158_s1 + $0xac] sm:$0xf] %v492_v43   ;;  %v500_v45 = vld [vmem:[#allocation0 + $0xc0] sm:$0xf]   ;;  %v504_v46 = vld [vmem:[#allocation0 + $0x70] sm:$0xf]  }
  0x4a   :  { %743 = vst [vmem:[%s1158_s1 + $0xb0] sm:$0xf] %v496_v44   ;;  %744 = vst [vmem:[%s1158_s1 + $0xb8] sm:$0xf] %v500_v45   ;;  %v508_v47 = vld [vmem:[#allocation0 + $0x118] sm:$0xf]  }
  0x4b   :  { %745 = vst [vmem:[%s1158_s1 + $0xb4] sm:$0xf] %v504_v46   ;;  %v512_v48 = vld [vmem:[#allocation0 + $0x198] sm:$0xf]   ;;  %v516_v49 = vld [vmem:[#allocation0 + $0xf0] sm:$0xf]  }
  0x4c   :  { %746 = vst [vmem:[%s1158_s1 + $0xbc] sm:$0xf] %v508_v47   ;;  %747 = vst [vmem:[%s1158_s1 + $0xc0] sm:$0xf] %v512_v48   ;;  %v520_v50 = vld [vmem:[#allocation0 + $0xa8] sm:$0xf]  }
  0x4d   :  { %748 = vst [vmem:[%s1158_s1 + $0xc8] sm:$0xf] %v516_v49   ;;  %v524_v51 = vld [vmem:[#allocation0 + $0xd8] sm:$0xf]   ;;  %v528_v52 = vld [vmem:[#allocation0 + $0x160] sm:$0xf]  }
  0x4e   :  { %749 = vst [vmem:[%s1158_s1 + $0xc4] sm:$0xf] %v520_v50   ;;  %750 = vst [vmem:[%s1158_s1 + $0xcc] sm:$0xf] %v524_v51   ;;  %v532_v53 = vld [vmem:[#allocation0 + $0xe0] sm:$0xf]  }
  0x4f   :  { %751 = vst [vmem:[%s1158_s1 + $0xd0] sm:$0xf] %v528_v52   ;;  %v536_v54 = vld [vmem:[#allocation0 + $0xe8] sm:$0xf]   ;;  %v540_v55 = vld [vmem:[#allocation0 + $0x78] sm:$0xf]  }
  0x50   :  { %752 = vst [vmem:[%s1158_s1 + $0xd8] sm:$0xf] %v532_v53   ;;  %753 = vst [vmem:[%s1158_s1 + $0xd4] sm:$0xf] %v536_v54   ;;  %v544_v56 = vld [vmem:[#allocation0 + $0x1b0] sm:$0xf]  }
  0x51   :  { %754 = vst [vmem:[%s1158_s1 + $0xdc] sm:$0xf] %v540_v55   ;;  %v548_v57 = vld [vmem:[#allocation0 + $0xc8] sm:$0xf]   ;;  %v552_v58 = vld [vmem:[#allocation0 + $0x90] sm:$0xf]  }
  0x52   :  { %755 = vst [vmem:[%s1158_s1 + $0xe0] sm:$0xf] %v544_v56   ;;  %756 = vst [vmem:[%s1158_s1 + $0xe8] sm:$0xf] %v548_v57   ;;  %v556_v59 = vld [vmem:[#allocation0 + $0x1a8] sm:$0xf]  }
  0x53   :  { %757 = vst [vmem:[%s1158_s1 + $0xe4] sm:$0xf] %v552_v58   ;;  %v560_v60 = vld [vmem:[#allocation0 + $0x1e0] sm:$0xf]   ;;  %758 = vst [vmem:[%s1158_s1 + $0xec] sm:$0xf] %v556_v59  }
  0x54   :  { %v564_v61 = vld [vmem:[#allocation0 + $0x120] sm:$0xf]   ;;  %759 = vst [vmem:[%s1158_s1 + $0xf0] sm:$0xf] %v560_v60   ;;  %v568_v62 = vld [vmem:[#allocation0 + $0x48] sm:$0xf]  }
  0x55   :  { %760 = vst [vmem:[%s1158_s1 + $0xf8] sm:$0xf] %v564_v61   ;;  %v572_v63 = vld [vmem:[#allocation0 + $0x148] sm:$0xf]   ;;  %761 = vst [vmem:[%s1158_s1 + $0xf4] sm:$0xf] %v568_v62  }
  0x56   :  { %762 = vst [vmem:[%s1158_s1 + $0xfc] sm:$0xf] %v572_v63  }

// kernel: convap_forward.1
= control target key start
LH: loop header
LB: loop body
LE: loop exit
PB: predicated region body
PF: predicated region fallthrough
CT: control target
= control target key end

     0   :  { %9 = vsyncpa [#allocation4], 0  ;;  %s950_s0 = inlined_call_operand.vmem [shape: f32[2,4,256], index: 0, kind: input, shape index: {}]   ;;  %s951_s1 = inlined_call_operand.vmem [shape: f32[256,128], index: 1, kind: input, shape index: {}]   ;;  %s952_s2 = inlined_call_operand.vmem [shape: f32[4,1,128], index: 2, kind: input, shape index: {}]   ;;  %s953_s3 = inlined_call_operand.vmem [shape: f32[1,128], index: 3, kind: input, shape index: {}]   ;;  %s954_s4 = inlined_call_operand.hbm [shape: f32[2,1,128], index: 4, kind: output, shape index: {}]  }
   0x1   :  { %11 = vsyncpa [#allocation4 + $0x1], 0  ;;  %s740_s15 = smov 0   ;;  %s742_s16 = smov 0  }
   0x2   :  { %s744_s17 = smov 0   ;;  %s746_s18 = smov 0  }
   0x3   :  { %s748_s19 = smov 0   ;;  %s750_s20 = smov 0  }
   0x4 LB: > { %s521_s21 = sadd.s32 4294967295, %s709_s20   ;;  %s522_s22 = sadd.s32 4294967294, %s709_s20   ;;  %s709_s20 = sphi %s750_s20, %s17_s20   ;;  %s705_s19 = sphi %s748_s19, %s961_s19   ;;  %s701_s18 = sphi %s746_s18, %s960_s18   ;;  %s697_s17 = sphi %s744_s17, %s959_s17   ;;  %s693_s16 = sphi %s742_s16, %s958_s16   ;;  %s689_s15 = sphi %s740_s15, %s957_s15  }
   0x5   : > { %s29_s23 = sadd.s32 1, %s705_s19  ;;  %s132_s24 = sadd.s32 1, %s697_s17 }
   0x6   : > { %p31_p0 = scmp.ge.s32.totalorder %s29_s23, 2  ;;  %p142_p1 = scmp.ne.s32.totalorder %s697_s17, %s693_s16 }
   0x7   : > { %p143_p2 = scmp.eq.s32.totalorder %s521_s21, 1  ;;  %p148_p3 = scmp.ne.s32.totalorder %s693_s16, %s689_s15 }
   0x8   : > { %s963_s23 = smov (%p31_p0, %s29_s23), 0  ;;  %p149_p5 = scmp.eq.s32.totalorder %s522_s22, 1 }
   0x9   : > { %p780_p4 = por %p143_p2, %p142_p1  ;;  %s129_s26 = ssub.s32 %s705_s19, %s963_s23 }
   0xa   : > { %p526_p6 = scmp.ge.s32.totalorder %s709_s20, 1  ;;  %p130_p7 = scmp.eq.s32.totalorder %s129_s26, 0 }
   0xb   : > { %p787_p8 = por %p149_p5, %p148_p3  ;;  %p195_p9 = scmp.lt.s32.totalorder %s709_s20, 3 }
   0xc   : > { %s793_s28 = scalar_select %p130_p7, %s697_s17, %s132_s24  }
   0xd   : > { %p196_p10 = pnand %p526_p6, %p195_p9 }
   0xe   : > { %p230_p11 = scmp.lt.s32.totalorder (!%p196_p10), %s701_s18, 1  ;;  %s713_s30 = smov (!%p196_p10), 1e-24  }
   0xf   : > { %199 = sbr.rel (%p196_p10) target bundleno = 561 (0x231), region = 36  ;;  %s227_s5 = sand.u32 (!%p196_p10), 1, %s693_s16  }
  0x10   : > { %s529_s6 = sshll.u32 (!%p196_p10), %s701_s18, 4  ;;  %s228_s7 = scalar_lea.vmem (!%p196_p10), [#allocation3], %s227_s5 }
  0x11   : > { %s437_s8 = sshll.u32 (!%p196_p10), %s228_s7, 4  ;;  %s435_s12 = scalar_lea.hbm (!%p196_p10), %s954_s4, %s529_s6  ;;  %s438_s8 = int_to_ptr.vmem [resolvable:$true] %s437_s8 }
  0x12   : > { %s633_s14 = scalar_lea.vmem (!%p196_p10), %s438_s8, 16  ;;  %s714_s21 = smov (!%p196_p10), [#allocation3]  }
  0x13   : > { %p634_p12 = scmp.ne.s32.totalorder (!%p196_p10), %s438_s8, %s633_s14  ;;  %s637_s22 = sshll.u32 (!%p196_p10), %s714_s21, 4  ;;  %s638_s22 = int_to_ptr.vmem [resolvable:$false] %s637_s22 }
  0x14   : > { %v283_v0 = vld [vmem:[%s951_s1 + $0xf8] sm:$0xff]  ;;  %v282_v2 = vld [vmem:[%s951_s1 + $0xf0] sm:$0xff]  ;;  %v281_v4 = vld [vmem:[%s951_s1 + $0xe8] sm:$0xff]  ;;  %s231_s13 = scalar_select %p230_p11, %s701_s18, 1  ;;  %v711_v34 = vmov 0.0   ;;  %v375_v42 = vlaneseq  ;;  %vm406_vm0 = vcmask 1040384  }
  0x15   : > { %v267_v1 = vld [vmem:[%s951_s1 + $0x78] sm:$0xff]  ;;  %533 = vmatprep.subr.mxu0 %v283_v0  ;;  %v266_v3 = vld [vmem:[%s951_s1 + $0x70] sm:$0xff]  ;;  %v265_v5 = vld [vmem:[%s951_s1 + $0x68] sm:$0xff]  ;;  %249 = vst [vmem:[#allocation2] sm:$0xf] %v711_v34  ;;  %p635_p13 = pnand %p634_p12, %p780_p4  ;;  %s639_s18 = scalar_lea.vmem %s638_s22, 32 }
  0x16   : > { %534 = vmatpush3.msra.mxu0 %v267_v1  ;;  %v280_v6 = vld [vmem:[%s951_s1 + $0xe0] sm:$0xff]  ;;  %s532_s26 = sshll.u32 %s231_s13, 3  ;;  %v279_v8 = vld [vmem:[%s951_s1 + $0xd8] sm:$0xff]  ;;  %v278_v10 = vld [vmem:[%s951_s1 + $0xd0] sm:$0xff]  ;;  %v712_v40 = vmov 1966171168   ;;  %p640_p1 = scmp.lt.s32.totalorder %s438_s8, %s638_s22 }
  0x17   : > { %535 = vmatprep.subr.mxu0 %v282_v2  ;;  %v264_v7 = vld [vmem:[%s951_s1 + $0x60] sm:$0xff]  ;;  %v263_v9 = vld [vmem:[%s951_s1 + $0x58] sm:$0xff]  ;;  %s237_s11 = scalar_lea.vmem %s950_s0, %s532_s26  ;;  %v262_v11 = vld [vmem:[%s951_s1 + $0x50] sm:$0xff]  ;;  %v373_v41 = vunpack.c.l.s4 %v712_v40  ;;  %v376_v44 = vshrl.u32 %v375_v42, 7  ;;  %s425_s13 = scalar_lea.sflag [#allocation4], %s227_s5 }
  0x18   : > { %536 = vmatpush3.msra.mxu0 %v266_v3  ;;  %v277_v12 = vld [vmem:[%s951_s1 + $0xc8] sm:$0xff]  ;;  %v250_v13 = vld [vmem:[%s237_s11] sm:$0xff]  ;;  %v275_v18 = vld [vmem:[%s951_s1 + $0xb8] sm:$0xff]  ;;  %p636_p0 = pneg %p635_p13  ;;  %p641_p2 = scmp.lt.s32.totalorder %s639_s18, %s633_s14 }
  0x19   : > { %537 = vmatprep.subr.mxu0 %v281_v4  ;;  %v261_v14 = vld [vmem:[%s951_s1 + $0x48] sm:$0xff]  ;;  %v285_v15 = vcombine.high %v250_v13, %v250_v13  ;;  %v276_v16 = vld [vmem:[%s951_s1 + $0xc0] sm:$0xff]  ;;  %v259_v19 = vld [vmem:[%s951_s1 + $0x38] sm:$0xff]  ;;  %v374_v43 = vunpack.c.0.s8 %v373_v41 }
  0x1a   : > { %538 = vmatpush3.msra.mxu0 %v265_v5  ;;  %v260_v17 = vld [vmem:[%s951_s1 + $0x40] sm:$0xff]  ;;  %v274_v20 = vld [vmem:[%s951_s1 + $0xb0] sm:$0xff]  ;;  %v273_v22 = vld [vmem:[%s951_s1 + $0xa8] sm:$0xff]  ;;  %p642_p3 = por %p641_p2, %p640_p1 }
  0x1b   : > { %539 = vmatprep.subr.mxu0 %v280_v6  ;;  %351 = vmatprep.mubr.f32.mxu0 %v285_v15  ;;  %v258_v21 = vld [vmem:[%s951_s1 + $0x30] sm:$0xff]  ;;  %v257_v23 = vld [vmem:[%s951_s1 + $0x28] sm:$0xff]  ;;  %v272_v24 = vld [vmem:[%s951_s1 + $0xa0] sm:$0xff]  ;;  %v377_v45 = vsub.s32 %v374_v43, %v376_v44 }
  0x1c   : > { %540 = vmatpush3.msra.mxu0 %v264_v7  ;;  %v256_v25 = vld [vmem:[%s951_s1 + $0x20] sm:$0xff]  ;;  %v271_v26 = vld [vmem:[%s951_s1 + $0x98] sm:$0xff]  ;;  %v270_v28 = vld [vmem:[%s951_s1 + $0x90] sm:$0xff]  ;;  %p643_p5 = pnand %p642_p3, %p636_p0 }
  0x1d   : > { %541 = vmatprep.subr.mxu0 %v279_v8  ;;  %v255_v27 = vld [vmem:[%s951_s1 + $0x18] sm:$0xff]  ;;  %v254_v29 = vld [vmem:[%s951_s1 + $0x10] sm:$0xff]  ;;  %v269_v30 = vld [vmem:[%s951_s1 + $0x88] sm:$0xff] }
  0x1e   : > { %542 = vmatpush3.msra.mxu0 %v263_v9  ;;  %v253_v31 = vld [vmem:[%s951_s1 + $0x8] sm:$0xff]  ;;  %v268_v32 = vld [vmem:[%s951_s1 + $0x80] sm:$0xff] }
  0x1f   : > { %543 = vmatprep.subr.mxu0 %v278_v10  ;;  %v252_v33 = vld [vmem:[%s951_s1] sm:$0xff] }
  0x20   : > { %544 = vmatpush3.msra.mxu0 %v262_v11  ;;  %v251_v36 = vld [vmem:[#allocation2] sm:$0xf] }
  0x21   : > { %545 = vmatprep.subr.mxu0 %v277_v12  ;;  %v364_v48 = vld [vmem:[%s952_s2] sm:$0x1]  ;;  %v365_v53 = vld [vmem:[%s952_s2 + $0x1] sm:$0x1]  ;;  %v366_v57 = vld [vmem:[%s952_s2 + $0x2] sm:$0x1] }
  0x22   : > { %546 = vmatpush3.msra.mxu0 %v261_v14  ;;  %v368_v54 = vld [vmem:[%s953_s3] sm:$0x1]  ;;  %v367_v61 = vld [vmem:[%s952_s2 + $0x3] sm:$0x1] }
  0x23   : > { %547 = vmatprep.subr.mxu0 %v276_v16 }
  0x24   : > { %548 = vmatpush3.msra.mxu0 %v260_v17 }
  0x25   : > { %549 = vmatprep.subr.mxu0 %v275_v18 }
  0x26   : > { %550 = vmatpush3.msra.mxu0 %v259_v19 }
  0x27   : > { %551 = vmatprep.subr.mxu0 %v274_v20 }
  0x28   : > { %552 = vmatpush3.msra.mxu0 %v258_v21 }
  0x29   : > { %553 = vmatprep.subr.mxu0 %v273_v22 }
  0x2a   : > { %554 = vmatpush3.msra.mxu0 %v257_v23 }
  0x2b   : > { %555 = vmatprep.subr.mxu0 %v272_v24 }
  0x2c   : > { %556 = vmatpush3.msra.mxu0 %v256_v25 }
  0x2d   : > { %557 = vmatprep.subr.mxu0 %v271_v26 }
  0x2e   : > { %558 = vmatpush3.msra.mxu0 %v255_v27 }
  0x2f   : > { %559 = vmatprep.subr.mxu0 %v270_v28 }
  0x30   : > { %560 = vmatpush3.msra.mxu0 %v254_v29 }
  0x31   : > { %561 = vmatprep.subr.mxu0 %v269_v30 }
  0x32   : > { %562 = vmatpush3.msra.mxu0 %v253_v31 }
  0x33   : > { %563 = vmatprep.subr.mxu0 %v268_v32 }
  0x34   : > { %564 = vmatpush3.msra.mxu0 %v252_v33 }
  0x35   : > { %352 = vmatmul.mubr.f32.vlgmr.msra.gmra.mxu0 %v250_v13 }
  0xf5   : > { %v565_v35 = vpop.f32.mrf.mxu0 }
  0xf7   : > { %v566_v37 = vpop.f32.mrf.mxu0 }
  0xf8   : > { %v567_v38 = vadd.f32 %v566_v37, %v565_v35 }
  0xfa   : > { %v357_v39 = vadd.f32 %v567_v38, %v251_v36 }
  0xfc   : > { %358 = vst [vmem:[#allocation2] sm:$0xf] %v357_v39 }
 0x103   : > { %v362_v46 = vld [vmem:[#allocation2] sm:$0xf] }
 0x104   : > { %v363_v47 = vmul.f32 0.015625, %v362_v46 }
 0x106   : > { %v378_v49 = vrot.slane %v363_v47, %v377_v45  ;;  %v369_v50 = vmul.f32 %v364_v48, %v363_v47 }
 0x108   : > { %v379_v51 = vcombine.high %v378_v49, %v378_v49  ;;  %v386_v52 = vrot.slane %v378_v49, %v377_v45  ;;  %v370_v58 = vadd.f32 %v369_v50, %v368_v54 }
 0x10a   : > { %v393_v55 = vrot.slane %v379_v51, %v377_v45  ;;  %v397_v56 = vcombine.high %v386_v52, %v386_v52 }
 0x10c   : > { %v395_v59 = vmul.f32 %v393_v55, %v365_v53  ;;  %v401_v60 = vcombine.high %v393_v55, %v393_v55  ;;  %v399_v63 = vmul.f32 %v397_v56, %v366_v57 }
 0x10e   : > { %v396_v62 = vadd.f32 %v395_v59, %v370_v58  ;;  %v403_v1 = vmul.f32 %v401_v60, %v367_v61 }
 0x110   : > { %v400_v0 = vadd.f32 %v399_v63, %v396_v62 }
 0x112   : > { %v404_v2 = vadd.f32 %v403_v1, %v400_v0 }
 0x114   : > { %v405_v3 = vmul.f32 %v404_v2, %v404_v2 }
 0x116   : > { %v407_v4 = vsel %vm406_vm0, %v405_v3, 0.0 }
 0x117   : > { %408 = vadd.xlane.f32.xlu0 %v407_v4 }
 0x1a0   : > { %v409_v5 = vpop.xlane.xlu0 %408 }
 0x1a1   : > { %v410_v6 = vrot.slane %v409_v5, 4 }
 0x1a3   : > { %v411_v7 = vadd.f32 %v410_v6, %v409_v5 }
 0x1a5   : > { %v412_v8 = vrot.slane %v411_v7, 2 }
 0x1a7   : > { %v413_v9 = vadd.f32 %v412_v8, %v411_v7 }
 0x1a9   : > { %v414_v10 = vrot.slane %v413_v9, 1 }
 0x1ab   : > { %v415_v11 = vadd.f32 %v414_v10, %v413_v9 }
 0x1ad   : > { %568 = vpush %v415_v11 }
 0x1de   : > { %s569_s29 = spop %568 }
 0x1df   : > { %s417_s26 = smax.f32 %s713_s30, %s569_s29 }
 0x1e0   : > { %v418_v12 = vstv %s417_s26 }
 0x1e1   : > { %631 = vrsqrt.f32 %v418_v12 }
 0x1ee   : > { %v632_v13 = vpop.eup %631 }
 0x1ef   : > { %570 = vpush %v632_v13 }
 0x220   : > { %s571_s9 = spop %570 }
 0x221   : > { %v421_v14 = vstv %s571_s9 }
 0x222   : > { %v422_v15 = vmul.f32 %v421_v14, %v404_v2 }
 0x224   : > { %423 = vst [vmem:[%s228_s7] sm:$0x1] %v422_v15 }
 0x225   : > { %646 = shalt.err (!%p643_p5)
}
 0x226   : > { %s647_s24 = scalar_lea.hbm %s435_s12, 16  ;;  %s651_s26 = scalar_lea.hbm %s954_s4, 32 }
 0x227   : > { %p648_p6 = scmp.ne.s32.totalorder %s435_s12, %s647_s24  ;;  %p652_p10 = scmp.lt.s32.totalorder %s435_s12, %s954_s4 }
 0x228   : > { %p653_p11 = scmp.lt.s32.totalorder %s651_s26, %s647_s24 }
 0x229   : > { %p649_p7 = pnand %p648_p6, %p780_p4 }
 0x22a   : > { %p654_p12 = por %p653_p11, %p652_p10 }
 0x22b   : > { %p650_p9 = pneg %p649_p7 }
 0x22d   : > { %p655_p13 = pnand %p654_p12, %p650_p9 }
 0x22f   : > { %658 = shalt.err (!%p655_p13)
}
 0x230   : > { %572 = dma.vmem_to_hbm [thread:$0]  (%p780_p4), %s438_s8, 16, %s435_s12, %s425_s13  }
 0x231 PF: > { %p578_p0 = scmp.ge.s32.totalorder %s709_s20, 2  ;;  %s449_s7 = sand.u32 1, %s689_s15  }
 0x232   : > { %s450_s9 = scalar_lea.sflag [#allocation4], %s449_s7 }
 0x233   : > { %p575_p1 = pnand %p578_p0, %p787_p8 }
 0x235   : > { %p576_p2 = pneg %p575_p1 }
 0x237   : > { %684 = dma.done.wait (%p576_p2), %s450_s9, 16  }
 0x238   : > { %686 = vsyncadd (%p576_p2), %s450_s9, 4294967280  ;;  %s17_s20 = sadd.s32 1, %s709_s20   ;;  %s957_s15 = smov %s693_s16 }
 0x239   : > { %p14_p3 = scmp.ge.s32.totalorder %s17_s20, 4   ;;  %s958_s16 = smov %s697_s17 }
 0x23a   : > { %s959_s17 = smov %s793_s28  ;;  %s960_s18 = smov %s705_s19 }
 0x23b   : > { %s961_s19 = smov %s963_s23  ;;  %16 = sbr.rel (!%p14_p3) target bundleno = 4 (0x4), region = 82 }
 0x240   :  { %454 = vsyncpa [#allocation4], 1 }
 0x241   :  { %456 = vsyncpa [#allocation4 + $0x1], 1 }

</bundles_post_ra>
